<compile_context>
chip_gen: v7x
topology: tpu7x:2x2x1
jax: 0.10.0
libtpu: 0.0.40
codegen_flags: <defaults>
</compile_context>

<pallas_src>
import functools
import math

import jax
import jax.numpy as jnp
from jax.experimental import pallas as pl
from jax.experimental.pallas import tpu as pltpu

_NARROW_SLAB_BYTES = 512            # slabs narrower than ~128 f32 lanes -> VMEM path
_STRIPE_BYTES = 4 * 1024 * 1024     # target per-DMA-stripe size for big inputs
_MAX_STRIPES = 4
_VMEM_TILE_BUDGET = 16 * 1024 * 1024  # conservative: fits v7x (64 MiB phys) and 32 MiB scoped


def _num_tensorcores() -> int:
    """Best-effort TensorCore count. Defaults to 1 (single grid step) on any doubt."""
    try:
        info = pltpu.get_tpu_info()
    except Exception:
        return 1
    for attr in ("num_cores", "core_count", "num_tensorcores",
                 "tensorcore_count", "cores_per_chip"):
        n = getattr(info, attr, None)
        if n is None:
            continue
        try:
            n = int(n)
        except (TypeError, ValueError):
            continue
        if 1 <= n <= 16:
            return n
    return 1


def _column_stripes(flat_size: int, itemsize: int):
    """Split a slab of `flat_size` columns into (start, width) stripes (>= ~4 MiB each)."""
    total_bytes = flat_size * itemsize
    n = max(1, min(_MAX_STRIPES, total_bytes // _STRIPE_BYTES))
    n = min(n, flat_size)
    base, rem = divmod(flat_size, n)
    stripes = []
    start = 0
    for s in range(n):
        w = base + (1 if s < rem else 0)
        stripes.append((start, w))
        start += w
    return stripes


def _make_dma_kernel(copy_descs, shard_of_copy, num_shards, rows):
    """Kernel: HBM->HBM async copies, all started before any wait (max overlap)."""

    def issue(shard, in_refs, out_ref, sem):
        started = []
        for ci, (ii, c_src, c_dst, w) in enumerate(copy_descs):
            if shard_of_copy[ci] != shard:
                continue
            cp = pltpu.make_async_copy(
                in_refs[ii].at[pl.ds(0, rows), pl.ds(c_src, w)],
                out_ref.at[pl.ds(0, rows), pl.ds(c_dst, w)],
                sem.at[ci],
            )
            cp.start()
            started.append(cp)
        # Only wait once every copy of this shard is in flight.
        for cp in started:
            cp.wait()

    def kernel(*refs):
        sem = refs[-1]       # one DMA semaphore per copy
        out_ref = refs[-2]   # raw HBM ref of the 2D output
        in_refs = refs[:-2]  # raw HBM refs of the 2D inputs

        if num_shards == 1:
            issue(0, in_refs, out_ref, sem)
        else:
            pid = pl.program_id(0)
            for shard in range(num_shards):
                @pl.when(pid == shard)
                def _(shard=shard):
                    issue(shard, in_refs, out_ref, sem)

    return kernel


def _concat_dma(inputs2d, flat_sizes, lead, total, out_dtype):
    """Pure HBM->HBM DMA path (same dtype, wide slabs). No VMEM used."""
    itemsize = jnp.dtype(out_dtype).itemsize

    # One copy descriptor per (input, column stripe); destination column
    # ranges are disjoint across ALL copies, so any sharding is race-free.
    copy_descs = []
    dst_off = 0
    for ii, fs in enumerate(flat_sizes):
        for (c_src, w) in _column_stripes(fs, itemsize):
            copy_descs.append((ii, c_src, dst_off + c_src, w))
        dst_off += fs
    n_copies = len(copy_descs)

    # Shard copies across TensorCores only when >1 TC is positively detected
    # (v7x); otherwise a single grid step issues everything (v5e/v6e optimum).
    num_shards = max(1, min(_num_tensorcores(), n_copies))
    shard_of_copy = tuple(ci % num_shards for ci in range(n_copies))

    kernel = _make_dma_kernel(tuple(copy_descs), shard_of_copy, num_shards, lead)
    hbm = pl.BlockSpec(memory_space=pl.ANY)

    return pl.pallas_call(
        kernel,
        out_shape=jax.ShapeDtypeStruct((lead, total), out_dtype),
        grid=(num_shards,),
        in_specs=[hbm] * len(inputs2d),
        out_specs=hbm,
        scratch_shapes=[pltpu.SemaphoreType.DMA((n_copies,))],
        compiler_params=pltpu.CompilerParams(
            dimension_semantics=(pltpu.PARALLEL,),
        ),
        cost_estimate=pl.CostEstimate(
            flops=0, transcendentals=0,
            bytes_accessed=int(2 * lead * total * itemsize)),
    )(*inputs2d)


def _concat_vmem(inputs2d, flat_sizes, lead, total, out_dtype):
    """Lane-dense VMEM-pipelined path: narrow slabs and/or in-kernel dtype casts."""
    offsets = []
    off = 0
    for fs in flat_sizes:
        offsets.append(off)
        off += fs

    out_itemsize = jnp.dtype(out_dtype).itemsize
    bytes_per_row = total * out_itemsize + sum(
        fs * jnp.dtype(x.dtype).itemsize for x, fs in zip(inputs2d, flat_sizes))
    # Double-buffered pipeline -> ~2x each block resident; keep tiles well
    # under the scoped-VMEM default on every generation.
    max_rows = max(8, (_VMEM_TILE_BUDGET // max(1, 2 * bytes_per_row)) // 8 * 8)
    row_tile = lead if lead <= max_rows else max_rows
    grid = (pl.cdiv(lead, row_tile),)

    def kernel(*refs):
        out_ref = refs[-1]
        in_refs = refs[:-1]
        for in_ref, col0, fs in zip(in_refs, offsets, flat_sizes):
            out_ref[:, col0:col0 + fs] = in_ref[...].astype(out_ref.dtype)

    in_specs = [pl.BlockSpec((row_tile, fs), lambda r: (r, 0)) for fs in flat_sizes]
    out_specs = pl.BlockSpec((row_tile, total), lambda r: (r, 0))

    return pl.pallas_call(
        kernel,
        out_shape=jax.ShapeDtypeStruct((lead, total), out_dtype),
        grid=grid,
        in_specs=in_specs,
        out_specs=out_specs,
        compiler_params=pltpu.CompilerParams(
            dimension_semantics=(pltpu.PARALLEL,),
        ),
        cost_estimate=pl.CostEstimate(
            flops=0, transcendentals=0,
            bytes_accessed=int(2 * lead * total * out_itemsize)),
    )(*inputs2d)


@functools.partial(jax.jit, static_argnames=("dim",))
def concat_pallas(*inputs, dim: int = 1):
    """torch.cat(inputs, dim=dim) implemented with Pallas TPU kernels."""
    if not inputs:
        raise ValueError("concat_pallas requires at least one input")

    ndim = inputs[0].ndim
    if not all(x.ndim == ndim for x in inputs):
        raise ValueError("all inputs must have the same rank")
    if dim < 0:
        dim += ndim
    if not 0 <= dim < ndim:
        raise ValueError(f"dim={dim} out of range for rank {ndim}")

    # torch.cat semantics: all non-concat dims must match.
    ref_shape = inputs[0].shape
    for x in inputs[1:]:
        for d in range(ndim):
            if d != dim and x.shape[d] != ref_shape[d]:
                raise ValueError(
                    f"non-concat dimension mismatch: {x.shape} vs {ref_shape} (dim={dim})")

    # torch.cat semantics: promote to a common dtype (zero-size inputs participate).
    out_dtype = jnp.result_type(*[x.dtype for x in inputs])

    out_shape = list(ref_shape)
    out_shape[dim] = sum(x.shape[dim] for x in inputs)
    out_shape = tuple(out_shape)

    # Degenerate / empty cases: nothing to copy.
    if any(s == 0 for s in out_shape):
        return jnp.zeros(out_shape, out_dtype)

    # Drop zero-sized inputs (nothing to copy, but they did affect promotion).
    inputs = tuple(x for x in inputs if x.shape[dim] > 0)
    if len(inputs) == 1:
        return inputs[0].astype(out_dtype)

    # Flatten to 2D: (prod(pre-dims), size_i * prod(post-dims)).  Row-major
    # layout makes concat along `dim` identical to concat along the last axis.
    lead = math.prod(ref_shape[:dim])
    flat_sizes = tuple(math.prod(x.shape[dim:]) for x in inputs)
    total = sum(flat_sizes)
    inputs2d = tuple(x.reshape(lead, fs) for x, fs in zip(inputs, flat_sizes))

    same_dtype = all(x.dtype == out_dtype for x in inputs2d)
    narrow = any(fs * jnp.dtype(x.dtype).itemsize < _NARROW_SLAB_BYTES
                 for x, fs in zip(inputs2d, flat_sizes))

    if same_dtype and not narrow:
        out2d = _concat_dma(inputs2d, flat_sizes, lead, total, out_dtype)
    else:
        # Narrow slabs and/or dtype promotion: lane-dense VMEM path, cast fused
        # into the kernel (no extra wrapper-side HBM pass).
        out2d = _concat_vmem(inputs2d, flat_sizes, lead, total, out_dtype)

    return out2d.reshape(out_shape)


if __name__ == "__main__":
    key = jax.random.PRNGKey(0)
    k1, k2, k3, k4, k5 = jax.random.split(key, 5)

    # --- Main DMA path: small NCHW inputs, module's default dim=1 usage. ---
    x1 = jax.random.normal(k1, (2, 4, 16, 16), dtype=jnp.float32)
    x2 = jax.random.normal(k2, (2, 6, 16, 16), dtype=jnp.float32)
    x3 = jax.random.normal(k3, (2, 2, 16, 16), dtype=jnp.float32)

    out = concat_pallas(x1, x2, x3, dim=1)
    out = jax.block_until_ready(out)
    ref = jnp.concatenate([x1, x2, x3], axis=1)
    assert out.shape == (2, 12, 16, 16), out.shape
    assert out.dtype == ref.dtype
    assert jnp.array_equal(out, ref), "dim=1 mismatch vs jnp.concatenate reference"

    # --- VMEM fallback path: narrow slabs + mixed dtype (cast fused in-kernel). ---
    a = jax.random.normal(k4, (4, 8, 16), dtype=jnp.float32)
    b = jax.random.normal(k5, (4, 8, 16), dtype=jnp.bfloat16)
    out2 = concat_pallas(a, b, dim=2)
    out2 = jax.block_until_ready(out2)
    ref2 = jnp.concatenate([a, b], axis=2)
    assert out2.shape == (4, 8, 32), out2.shape
    assert out2.dtype == ref2.dtype
    assert jnp.array_equal(out2, ref2), "dim=-1 mixed-dtype mismatch vs reference"

    print("KERNEL_OK")
</pallas_src>

<mosaic_0001>
module attributes {stable_mosaic.version = 11 : i64} {
  func.func @kernel(%arg0: i32, %arg1: memref<2x1024xf32, #tpu.memory_space<any>>, %arg2: memref<2x1536xf32, #tpu.memory_space<any>>, %arg3: memref<2x512xf32, #tpu.memory_space<any>>, %arg4: memref<2x3072xf32, #tpu.memory_space<any>>, %arg5: memref<3x!tpu.dma_semaphore, #tpu.memory_space<semaphore_mem>>) attributes {dimension_semantics = [#tpu.dimension_semantics<parallel>], iteration_bounds = array<i64: 1>, scalar_prefetch = 0 : i64, scratch_operands = 1 : i64, tpu.core_type = #tpu.core_type<tc>, window_params = [{}, {}, {}, {}]} {
    %c0_i32 = arith.constant 0 : i32
    %c0_i32_0 = arith.constant 0 : i32
    %c0_i32_1 = arith.constant 0 : i32
    %0 = tpu.memref_slice %arg1[%c0_i32_0, %c0_i32_1] : memref<2x1024xf32, #tpu.memory_space<any>> -> memref<2x1024xf32, #tpu.memory_space<any>>
    %c0_i32_2 = arith.constant 0 : i32
    %c0_i32_3 = arith.constant 0 : i32
    %1 = tpu.memref_slice %arg4[%c0_i32_2, %c0_i32_3] : memref<2x3072xf32, #tpu.memory_space<any>> -> memref<2x1024xf32, #tpu.memory_space<any>>
    %2 = tpu.memref_slice %arg5[%c0_i32] : memref<3x!tpu.dma_semaphore, #tpu.memory_space<semaphore_mem>> -> memref<1x!tpu.dma_semaphore, #tpu.memory_space<semaphore_mem>>
    %3 = tpu.memref_squeeze %2 : memref<1x!tpu.dma_semaphore, #tpu.memory_space<semaphore_mem>> -> memref<!tpu.dma_semaphore, #tpu.memory_space<semaphore_mem>>
    tpu.enqueue_dma source(%0 : memref<2x1024xf32, #tpu.memory_space<any>>) target(%1 : memref<2x1024xf32, #tpu.memory_space<any>>) target_semaphore(%3 : memref<!tpu.dma_semaphore, #tpu.memory_space<semaphore_mem>>)
    %c1_i32 = arith.constant 1 : i32
    %c0_i32_4 = arith.constant 0 : i32
    %c0_i32_5 = arith.constant 0 : i32
    %4 = tpu.memref_slice %arg2[%c0_i32_4, %c0_i32_5] : memref<2x1536xf32, #tpu.memory_space<any>> -> memref<2x1536xf32, #tpu.memory_space<any>>
    %c0_i32_6 = arith.constant 0 : i32
    %c1024_i32 = arith.constant 1024 : i32
    %5 = tpu.memref_slice %arg4[%c0_i32_6, %c1024_i32] : memref<2x3072xf32, #tpu.memory_space<any>> -> memref<2x1536xf32, #tpu.memory_space<any>>
    %6 = tpu.memref_slice %arg5[%c1_i32] : memref<3x!tpu.dma_semaphore, #tpu.memory_space<semaphore_mem>> -> memref<1x!tpu.dma_semaphore, #tpu.memory_space<semaphore_mem>>
    %7 = tpu.memref_squeeze %6 : memref<1x!tpu.dma_semaphore, #tpu.memory_space<semaphore_mem>> -> memref<!tpu.dma_semaphore, #tpu.memory_space<semaphore_mem>>
    tpu.enqueue_dma source(%4 : memref<2x1536xf32, #tpu.memory_space<any>>) target(%5 : memref<2x1536xf32, #tpu.memory_space<any>>) target_semaphore(%7 : memref<!tpu.dma_semaphore, #tpu.memory_space<semaphore_mem>>)
    %c2_i32 = arith.constant 2 : i32
    %c0_i32_7 = arith.constant 0 : i32
    %c0_i32_8 = arith.constant 0 : i32
    %8 = tpu.memref_slice %arg3[%c0_i32_7, %c0_i32_8] : memref<2x512xf32, #tpu.memory_space<any>> -> memref<2x512xf32, #tpu.memory_space<any>>
    %c0_i32_9 = arith.constant 0 : i32
    %c2560_i32 = arith.constant 2560 : i32
    %9 = tpu.memref_slice %arg4[%c0_i32_9, %c2560_i32] : memref<2x3072xf32, #tpu.memory_space<any>> -> memref<2x512xf32, #tpu.memory_space<any>>
    %10 = tpu.memref_slice %arg5[%c2_i32] : memref<3x!tpu.dma_semaphore, #tpu.memory_space<semaphore_mem>> -> memref<1x!tpu.dma_semaphore, #tpu.memory_space<semaphore_mem>>
    %11 = tpu.memref_squeeze %10 : memref<1x!tpu.dma_semaphore, #tpu.memory_space<semaphore_mem>> -> memref<!tpu.dma_semaphore, #tpu.memory_space<semaphore_mem>>
    tpu.enqueue_dma source(%8 : memref<2x512xf32, #tpu.memory_space<any>>) target(%9 : memref<2x512xf32, #tpu.memory_space<any>>) target_semaphore(%11 : memref<!tpu.dma_semaphore, #tpu.memory_space<semaphore_mem>>)
    %c0_i32_10 = arith.constant 0 : i32
    %c0_i32_11 = arith.constant 0 : i32
    %c0_i32_12 = arith.constant 0 : i32
    %12 = tpu.memref_slice %arg1[%c0_i32_11, %c0_i32_12] : memref<2x1024xf32, #tpu.memory_space<any>> -> memref<2x1024xf32, #tpu.memory_space<any>>
    %c0_i32_13 = arith.constant 0 : i32
    %c0_i32_14 = arith.constant 0 : i32
    %13 = tpu.memref_slice %arg4[%c0_i32_13, %c0_i32_14] : memref<2x3072xf32, #tpu.memory_space<any>> -> memref<2x1024xf32, #tpu.memory_space<any>>
    %14 = tpu.memref_slice %arg5[%c0_i32_10] : memref<3x!tpu.dma_semaphore, #tpu.memory_space<semaphore_mem>> -> memref<1x!tpu.dma_semaphore, #tpu.memory_space<semaphore_mem>>
    %15 = tpu.memref_squeeze %14 : memref<1x!tpu.dma_semaphore, #tpu.memory_space<semaphore_mem>> -> memref<!tpu.dma_semaphore, #tpu.memory_space<semaphore_mem>>
    tpu.wait_dma2 semaphore(%15 : memref<!tpu.dma_semaphore, #tpu.memory_space<semaphore_mem>>) src(%12 : memref<2x1024xf32, #tpu.memory_space<any>>) dst(%13 : memref<2x1024xf32, #tpu.memory_space<any>>)
    %c1_i32_15 = arith.constant 1 : i32
    %c0_i32_16 = arith.constant 0 : i32
    %c0_i32_17 = arith.constant 0 : i32
    %16 = tpu.memref_slice %arg2[%c0_i32_16, %c0_i32_17] : memref<2x1536xf32, #tpu.memory_space<any>> -> memref<2x1536xf32, #tpu.memory_space<any>>
    %c0_i32_18 = arith.constant 0 : i32
    %c1024_i32_19 = arith.constant 1024 : i32
    %17 = tpu.memref_slice %arg4[%c0_i32_18, %c1024_i32_19] : memref<2x3072xf32, #tpu.memory_space<any>> -> memref<2x1536xf32, #tpu.memory_space<any>>
    %18 = tpu.memref_slice %arg5[%c1_i32_15] : memref<3x!tpu.dma_semaphore, #tpu.memory_space<semaphore_mem>> -> memref<1x!tpu.dma_semaphore, #tpu.memory_space<semaphore_mem>>
    %19 = tpu.memref_squeeze %18 : memref<1x!tpu.dma_semaphore, #tpu.memory_space<semaphore_mem>> -> memref<!tpu.dma_semaphore, #tpu.memory_space<semaphore_mem>>
    tpu.wait_dma2 semaphore(%19 : memref<!tpu.dma_semaphore, #tpu.memory_space<semaphore_mem>>) src(%16 : memref<2x1536xf32, #tpu.memory_space<any>>) dst(%17 : memref<2x1536xf32, #tpu.memory_space<any>>)
    %c2_i32_20 = arith.constant 2 : i32
    %c0_i32_21 = arith.constant 0 : i32
    %c0_i32_22 = arith.constant 0 : i32
    %20 = tpu.memref_slice %arg3[%c0_i32_21, %c0_i32_22] : memref<2x512xf32, #tpu.memory_space<any>> -> memref<2x512xf32, #tpu.memory_space<any>>
    %c0_i32_23 = arith.constant 0 : i32
    %c2560_i32_24 = arith.constant 2560 : i32
    %21 = tpu.memref_slice %arg4[%c0_i32_23, %c2560_i32_24] : memref<2x3072xf32, #tpu.memory_space<any>> -> memref<2x512xf32, #tpu.memory_space<any>>
    %22 = tpu.memref_slice %arg5[%c2_i32_20] : memref<3x!tpu.dma_semaphore, #tpu.memory_space<semaphore_mem>> -> memref<1x!tpu.dma_semaphore, #tpu.memory_space<semaphore_mem>>
    %23 = tpu.memref_squeeze %22 : memref<1x!tpu.dma_semaphore, #tpu.memory_space<semaphore_mem>> -> memref<!tpu.dma_semaphore, #tpu.memory_space<semaphore_mem>>
    tpu.wait_dma2 semaphore(%23 : memref<!tpu.dma_semaphore, #tpu.memory_space<semaphore_mem>>) src(%20 : memref<2x512xf32, #tpu.memory_space<any>>) dst(%21 : memref<2x512xf32, #tpu.memory_space<any>>)
    return
  }
}

</mosaic_0001>

<bundles_post_ra>
// kernel: concat_pallas.1
= control target key start
LH: loop header
LB: loop body
LE: loop exit
PB: predicated region body
PF: predicated region fallthrough
CT: control target
= control target key end

     0   :  { %s269_s0 = inlined_call_operand.vmem [shape: f32[2,1024], index: 0, kind: input, shape index: {}]   ;;  %s270_s1 = inlined_call_operand.vmem [shape: f32[2,1536], index: 1, kind: input, shape index: {}]   ;;  %s271_s2 = inlined_call_operand.vmem [shape: f32[2,512], index: 2, kind: input, shape index: {}]   ;;  %s272_s3 = inlined_call_operand.vmem [shape: f32[2,3072], index: 3, kind: output, shape index: {}]  }
   0x1   :  { %v40_v0 = vld [vmem:[%s269_s0] sm:$0xff]  ;;  %v42_v1 = vld [vmem:[%s269_s0 + $0x8] sm:$0xff] }
   0x2   :  { %41 = vst [vmem:[%s272_s3] sm:$0xff] %v40_v0  ;;  %43 = vst [vmem:[%s272_s3 + $0x8] sm:$0xff] %v42_v1 }
   0x3   :  { %51 = vsyncadd [#allocation2], 256  ;;  %v86_v2 = vld [vmem:[%s270_s1] sm:$0xff]  ;;  %v88_v3 = vld [vmem:[%s270_s1 + $0x8] sm:$0xff] }
   0x4   :  { %198 = vst [vmem:[%s272_s3 + $0x10] sm:$0xff] %v86_v2  ;;  %199 = vst [vmem:[%s272_s3 + $0x18] sm:$0xff] %v88_v3  ;;  %v90_v4 = vld [vmem:[%s270_s1 + $0x10] sm:$0xff] }
   0x5   :  { %200 = vst [vmem:[%s272_s3 + $0x20] sm:$0xff] %v90_v4 }
   0x6   :  { %99 = vsyncadd [#allocation2 + $0x1], 384  ;;  %v134_v5 = vld [vmem:[%s271_s2] sm:$0xff] }
   0x7   :  { %202 = vst [vmem:[%s272_s3 + $0x28] sm:$0xff] %v134_v5 }
   0x8   :  { %143 = vsyncadd [#allocation2 + $0x2], 128 }
   0x9   :  { %207 = dma.done.wait [#allocation2], 256 }
   0xa   :  { %208 = vsyncadd [#allocation2], 4294967040 }
   0xb   :  { %209 = dma.done.wait [#allocation2 + $0x1], 384 }
   0xc   :  { %210 = vsyncadd [#allocation2 + $0x1], 4294966912 }
   0xd   :  { %211 = dma.done.wait [#allocation2 + $0x2], 128 }
   0xe   :  { %212 = vsyncadd [#allocation2 + $0x2], 4294967168 }
   0xf   :  { %154 = vsyncmov [#allocation2] }
  0x12   :  { %s155_s1 = vpop.sfrf %154 }
  0x13   :  { %p204_p0 = scmp.ne.s32.totalorder %s155_s1, 0 }
  0x15   :  { %159 = shalt.err (%p204_p0)  }
  0x16   :  { %161 = vsyncmov [#allocation2 + $0x1] }
  0x19   :  { %s162_s8 = vpop.sfrf %161 }
  0x1a   :  { %p205_p1 = scmp.ne.s32.totalorder %s162_s8, 0 }
  0x1c   :  { %166 = shalt.err (%p205_p1)  }
  0x1d   :  { %168 = vsyncmov [#allocation2 + $0x2] }
  0x20   :  { %s169_s2 = vpop.sfrf %168 }
  0x21   :  { %p206_p2 = scmp.ne.s32.totalorder %s169_s2, 0 }
  0x23   :  { %173 = shalt.err (%p206_p2)  }

</bundles_post_ra>
